<compile_context>
chip_gen: v6e
topology: v6e:2x2x1
jax: 0.10.0
libtpu: 0.0.40
codegen_flags: <defaults>
</compile_context>

<pallas_src>
import functools
import math

import jax
import jax.numpy as jnp
from jax.experimental import pallas as pl
from jax.experimental.pallas import tpu as pltpu


def _round_up(v, m):
    return (v + m - 1) // m * m


def _largest_tile(total, target):
    """Largest multiple-of-128 divisor of `total` (itself a multiple of 128) <= target."""
    q = total // 128
    tq = max(1, target // 128)
    best = 1
    d = 1
    while d * d <= q:
        if q % d == 0:
            if d <= tq and d > best:
                best = d
            e = q // d
            if e <= tq and e > best:
                best = e
        d += 1
    return best * 128


def _lrn_kernel(x_ref, band_ref, o_ref, *, scale, beta, k):
    # Block shapes (batch dim squeezed): x (C, THW), band (C, C).
    x = x_ref[...].astype(jnp.float32)
    sq = x * x

    # Cross-channel sliding-window sum of squares for all channels at once:
    # a single banded (C, C) @ (C, THW) MXU matmul.  The band is DMA'd once and
    # stays resident (constant index_map), so no per-step O(C^2) VPU rebuild.
    # TODO(synk): for very large C (>= ~256 on v7x, ~512 on v6e) replace this with
    # (size-1) pltpu.roll sublane shifts + masked VPU adds to stay memory-bound.
    win = jnp.dot(band_ref[...], sq, preferred_element_type=jnp.float32)
    base = k + scale * win                      # strictly > 0, safe

    if abs(beta - 0.75) < 1e-12:
        r = jax.lax.rsqrt(base)                 # base^-1/2  (EUP)
        inv = r * jnp.sqrt(r)                   # base^-3/4
    else:
        inv = jnp.exp(-beta * jnp.log(base))    # base^-beta

    o_ref[...] = (x * inv).astype(o_ref.dtype)


def spatial_cross_map_lrn(x, *, size, alpha=0.0001, beta=0.75, k=1.0):
    """Matches SpatialCrossMapLRN.forward for 3-D (CHW) or 4-D (NCHW) inputs."""
    is_batch = x.ndim == 4
    if not is_batch:
        x = x[None]                              # like unsqueeze(0)

    N, C, H, W = x.shape
    HW = H * W
    x2 = x.reshape(N, C, HW)                     # lane axis = H*W (lane-dense)

    # --- spatial tile sizing -------------------------------------------------
    # Pad only to a multiple of 128 lanes (no whole-tensor pad to a tile multiple).
    HWp = _round_up(HW, 128)

    # Target ~512K f32 elements (~2 MiB input) per block.  Account for sublane
    # padding when C < 8 (a (C, THW) f32 buffer physically occupies ceil8(C)
    # sublanes).  Total VMEM footprint ~ 9x one f32 block -> ~18-20 MiB worst case.
    max_block_elems = 512 * 1024
    c_eff = _round_up(max(C, 1), 8)
    target_thw = max(128, (max_block_elems // c_eff) // 128 * 128)
    target_thw = min(target_thw, HWp)

    # Largest multiple-of-128 divisor of HWp that fits the budget: no extra
    # padding beyond 128, no wasted DMA/compute on dead lanes.
    thw = _largest_tile(HWp, target_thw)

    # Guarantee >= 2 grid steps when N == 1 so both v7x TensorCores get work.
    if N == 1 and (HWp // thw) < 2 and HWp >= 256:
        thw = _largest_tile(HWp, max(128, (HWp // 2) // 128 * 128))

    if HWp != HW:
        # Zero padding is safe: padded lanes give x=0 -> 0 / (k)**beta = 0 and are
        # sliced away below; the channel window never mixes spatial positions.
        x2 = jnp.pad(x2, ((0, 0), (0, 0), (0, HWp - HW)))

    # --- banded window matrix (built once, resident in VMEM) -----------------
    half = size // 2                             # == math.floor(size / 2.0)
    ci = jnp.arange(C, dtype=jnp.int32)[:, None]
    cj = jnp.arange(C, dtype=jnp.int32)[None, :]
    band = (jnp.abs(ci - cj) <= half).astype(jnp.float32)   # (C, C)

    kernel = functools.partial(
        _lrn_kernel,
        scale=float(alpha) / float(size), beta=float(beta), k=float(k),
    )

    itemsize = jnp.dtype(x.dtype).itemsize
    cost = pl.CostEstimate(
        flops=int(2 * N * C * C * HWp + 6 * N * C * HWp),
        transcendentals=int(2 * N * C * HWp),
        bytes_accessed=int(2 * N * C * HWp * itemsize + C * C * 4),
    )

    out = pl.pallas_call(
        kernel,
        out_shape=jax.ShapeDtypeStruct((N, C, HWp), x.dtype),
        grid_spec=pltpu.PrefetchScalarGridSpec(
            num_scalar_prefetch=0,
            grid=(N, HWp // thw),
            in_specs=[
                pl.BlockSpec((pl.Squeezed(), C, thw), lambda n, t: (n, 0, t)),
                pl.BlockSpec((C, C), lambda n, t: (0, 0)),   # band: resident
            ],
            out_specs=pl.BlockSpec((pl.Squeezed(), C, thw), lambda n, t: (n, 0, t)),
        ),
        compiler_params=pltpu.CompilerParams(
            dimension_semantics=("parallel", "parallel"),
            vmem_limit_bytes=32 * 1024 * 1024,
        ),
        cost_estimate=cost,
    )(x2, band)

    if HWp != HW:
        out = out[:, :, :HW]
    out = out.reshape(N, C, H, W)
    if not is_batch:
        out = out[0]
    return out


def _reference_lrn(x, *, size, alpha=0.0001, beta=0.75, k=1.0):
    # Pure-JAX reference reproducing the PyTorch loop exactly.
    was_3d = x.ndim == 3
    if was_3d:
        x = x[None]
    C = x.shape[1]
    half = int(math.floor(size / 2.0))
    sq = x.astype(jnp.float32) ** 2
    chans = []
    for c in range(C):
        lb = max(0, c - half)
        ub = min(C - 1, c + half)
        s = sq[:, lb:ub + 1].sum(axis=1)
        denom = (k + alpha / size * s) ** beta
        chans.append((x[:, c].astype(jnp.float32) / denom)[:, None])
    out = jnp.concatenate(chans, axis=1).astype(x.dtype)
    if was_3d:
        out = out[0]
    return out


if __name__ == "__main__":
    size = 3  # LRN window parameter (window = 2*floor(size/2)+1 channels)

    # Batched NCHW case.
    N, C, H, W = 2, 4, 16, 16
    x = jax.random.normal(jax.random.PRNGKey(0), (N, C, H, W), dtype=jnp.float32)
    out = jax.block_until_ready(
        spatial_cross_map_lrn(x, size=size, alpha=0.0001, beta=0.75, k=1.0))
    ref = _reference_lrn(x, size=size, alpha=0.0001, beta=0.75, k=1.0)
    assert out.shape == (N, C, H, W)
    assert jnp.allclose(out, ref, atol=1e-5, rtol=1e-5), "batched mismatch"

    # Unbatched CHW case with spatial size not a multiple of 128
    # (exercises the 128-lane padding path and the 3-D input branch).
    x3 = jax.random.normal(jax.random.PRNGKey(1), (4, 7, 9), dtype=jnp.float32)
    out3 = jax.block_until_ready(
        spatial_cross_map_lrn(x3, size=size, alpha=0.0001, beta=0.75, k=1.0))
    ref3 = _reference_lrn(x3, size=size, alpha=0.0001, beta=0.75, k=1.0)
    assert out3.shape == (4, 7, 9)
    assert jnp.allclose(out3, ref3, atol=1e-5, rtol=1e-5), "unbatched mismatch"

    print("KERNEL_OK")
</pallas_src>

<mosaic_0001>
module attributes {stable_mosaic.version = 11 : i64} {
  func.func @_lrn_kernel(%arg0: i32, %arg1: i32, %arg2: memref<1x4x256xf32, #tpu.memory_space<vmem>>, %arg3: memref<4x4xf32, #tpu.memory_space<vmem>>, %arg4: memref<1x4x256xf32, #tpu.memory_space<vmem>>) attributes {dimension_semantics = [#tpu.dimension_semantics<parallel>, #tpu.dimension_semantics<parallel>], iteration_bounds = array<i64: 2, 1>, scalar_prefetch = 0 : i64, scratch_operands = 0 : i64, tpu.core_type = #tpu.core_type<tc>, window_params = [{transform_indices = @transform_0, window_bounds = array<i64: 1, 4, 256>}, {pipeline_mode = #tpu.pipeline_mode<synchronous>, transform_indices = @transform_1, window_bounds = array<i64: 4, 4>}, {transform_indices = @transform_2, window_bounds = array<i64: 1, 4, 256>}]} {
    %c0 = arith.constant 0 : index
    %c0_0 = arith.constant 0 : index
    %c0_1 = arith.constant 0 : index
    %0 = vector.load %arg2[%c0, %c0_0, %c0_1] : memref<1x4x256xf32, #tpu.memory_space<vmem>>, vector<1x4x256xf32>
    %1 = vector.shape_cast %0 : vector<1x4x256xf32> to vector<4x256xf32>
    %2 = arith.mulf %1, %1 : vector<4x256xf32>
    %c0_2 = arith.constant 0 : index
    %c0_3 = arith.constant 0 : index
    %3 = vector.load %arg3[%c0_2, %c0_3] : memref<4x4xf32, #tpu.memory_space<vmem>>, vector<4x4xf32>
    %cst = arith.constant dense<0.000000e+00> : vector<4x256xf32>
    %4 = tpu.matmul %3, %2, %cst {dimension_numbers = #tpu.dot_dimension_numbers<[1], [0], [0], [1], [0, 0, 1, 1], [], []>} : vector<4x4xf32>, vector<4x256xf32>, vector<4x256xf32> -> vector<4x256xf32>
    %cst_4 = arith.constant 3.33333337E-5 : f32
    %5 = vector.broadcast %cst_4 : f32 to vector<4x256xf32>
    %6 = arith.mulf %5, %4 : vector<4x256xf32>
    %cst_5 = arith.constant 1.000000e+00 : f32
    %7 = vector.broadcast %cst_5 : f32 to vector<4x256xf32>
    %8 = arith.addf %7, %6 : vector<4x256xf32>
    %9 = math.rsqrt %8 : vector<4x256xf32>
    %10 = math.sqrt %9 : vector<4x256xf32>
    %11 = arith.mulf %9, %10 : vector<4x256xf32>
    %12 = arith.mulf %1, %11 : vector<4x256xf32>
    %c0_6 = arith.constant 0 : index
    %c0_7 = arith.constant 0 : index
    %c0_8 = arith.constant 0 : index
    %13 = vector.load %arg4[%c0_6, %c0_7, %c0_8] : memref<1x4x256xf32, #tpu.memory_space<vmem>>, vector<1x4x256xf32>
    %14 = vector.shape_cast %13 : vector<1x4x256xf32> to vector<4x256xf32>
    %15 = vector.shape_cast %12 : vector<4x256xf32> to vector<1x4x256xf32>
    tpu.vector_store %arg4[%c0_6, %c0_7, %c0_8], %15 {strides = array<i32>} : memref<1x4x256xf32, #tpu.memory_space<vmem>>, vector<1x4x256xf32>,
    return
  }
  func.func @transform_0(%arg0: i32, %arg1: i32) -> (i32, i32, i32) {
    %c0_i32 = arith.constant 0 : i32
    %c0_i32_0 = arith.constant 0 : i32
    return %arg0, %c0_i32, %arg1 : i32, i32, i32
  }
  func.func @transform_1(%arg0: i32, %arg1: i32) -> (i32, i32) {
    %c0_i32 = arith.constant 0 : i32
    %c0_i32_0 = arith.constant 0 : i32
    %c0_i32_1 = arith.constant 0 : i32
    return %c0_i32, %c0_i32_0 : i32, i32
  }
  func.func @transform_2(%arg0: i32, %arg1: i32) -> (i32, i32, i32) {
    %c0_i32 = arith.constant 0 : i32
    %c0_i32_0 = arith.constant 0 : i32
    return %arg0, %c0_i32, %arg1 : i32, i32, i32
  }
}

</mosaic_0001>

<bundles_post_ra>
// kernel: tpu_custom_call.1
= control target key start
LH: loop header
LB: loop body
LE: loop exit
PB: predicated region body
PF: predicated region fallthrough
CT: control target
= control target key end

     0   :  { %7 = vsyncpa [#allocation3], 0  ;;  %s845_s0 = inlined_call_operand.hbm [shape: f32[2,4,256], index: 0, kind: input, shape index: {}]   ;;  %s846_s1 = inlined_call_operand.hbm [shape: f32[4,4], index: 1, kind: input, shape index: {}]   ;;  %s847_s2 = inlined_call_operand.hbm [shape: f32[2,4,256], index: 2, kind: output, shape index: {}]  }
   0x1   :  { %9 = vsyncpa [#allocation3 + $0x1], 0 }
   0x2   :  { %10 = vsyncpa [#allocation6], 0 }
   0x3   :  { %11 = vsyncpa [#allocation4], 0 }
   0x4   :  { %13 = vsyncpa [#allocation4 + $0x1], 0  ;;  %s680_s9 = smov 0   ;;  %s682_s10 = smov 0  }
   0x5   :  { %s684_s11 = smov 0   ;;  %s686_s12 = smov 0  }
   0x6   :  { %s688_s13 = smov 0   ;;  %s690_s14 = smov 0  }
   0x7 LB: > { %s417_s15 = sadd.s32 4294967295, %s659_s14   ;;  %s418_s16 = sadd.s32 4294967294, %s659_s14   ;;  %s659_s14 = sphi %s690_s14, %s19_s14   ;;  %s655_s13 = sphi %s688_s13, %s864_s13   ;;  %s651_s12 = sphi %s686_s12, %s863_s12   ;;  %s647_s11 = sphi %s684_s11, %s862_s11   ;;  %s643_s10 = sphi %s682_s10, %s861_s10   ;;  %s639_s9 = sphi %s680_s9, %s860_s9  }
   0x8   : > { %p53_p0 = scmp.ne.s32.totalorder %s643_s10, %s639_s9  ;;  %p714_p1 = scmp.eq.s32.totalorder %s417_s15, 0 }
   0x9   : > { %p718_p2 = scmp.eq.s32.totalorder %s417_s15, 1  ;;  %p106_p3 = scmp.eq.s32.totalorder %s418_s16, 1 }
   0xa   : > { %p724_p4 = por %p714_p1, %p53_p0  ;;  %p419_p5 = scmp.ge.s32.totalorder %s659_s14, 1 }
   0xb   : > { %p729_p6 = por %p106_p3, %p53_p0  ;;  %p113_p7 = scmp.lt.s32.totalorder %s659_s14, 3 }
   0xc   : > { %s851_s19 = scalar_select %p724_p4, 1, 0 }
   0xd   : > { %s852_s20 = scalar_select %p729_p6, 1, 0 }
   0xe   : > { %p734_p8 = pnand %p419_p5, %p113_p7  ;;  %s661_s22 = smov [#allocation5]  }
   0xf   : > { %s126_s23 = sshll.u32 %s661_s22, 4  ;;  %s31_s25 = sadd.s32 1, %s655_s13  ;;  %s127_s23 = int_to_ptr.vmem [resolvable:$true] %s126_s23 }
  0x10   : > { %p447_p10 = pneg %p734_p8  ;;  %s40_s26 = sadd.s32 1, %s647_s11 }
  0x11   : > { %p33_p12 = scmp.ge.s32.totalorder %s31_s25, 2  ;;  %s532_s27 = scalar_lea.vmem %s127_s23, 64 }
  0x12   : > { %p743_p11 = pnand %p447_p10, %p714_p1  ;;  %p533_p0 = scmp.ne.s32.totalorder %s127_s23, %s532_s27 }
  0x13   : > { %p540_p7 = scmp.lt.s32.totalorder %s127_s23, %s127_s23  ;;  %p541_p6 = scmp.lt.s32.totalorder %s532_s27, %s532_s27 }
  0x14   : > { %p523_p13 = pneg %p743_p11 }
  0x15   : > { %p542_p9 = por %p541_p6, %p540_p7 }
  0x16   : > { %p535_p3 = pnand %p533_p0, %p523_p13 }
  0x18   : > { %p536_p5 = pneg %p535_p3 }
  0x1a   : > { %p543_p4 = pnand %p542_p9, %p536_p5 }
  0x1c   : > { %546 = shalt.err (!%p543_p4)
}
  0x1d   : > { %450 = dma.hbm_to_vmem [thread:$0]  (!%p743_p11), %s846_s1, 64, %s127_s23, [#allocation6]  }
  0x1e   : > { %s866_s25 = smov (%p33_p12, %s31_s25), 0  ;;  %p47_p6 = scmp.ne.s32.totalorder %s647_s11, %s643_s10 }
  0x1f   : > { %p48_p4 = scmp.eq.s32.totalorder %s659_s14, 0  ;;  %s35_s30 = ssub.s32 %s655_s13, %s866_s25 }
  0x20   : > { %p460_p9 = scmp.lt.s32.totalorder %s659_s14, 2  ;;  %p38_p10 = scmp.eq.s32.totalorder %s35_s30, 0 }
  0x21   : > { %p49_p13 = por %p48_p4, %p47_p6  ;;  %p766_p0 = por %p718_p2, %p47_p6 }
  0x22   : > { %s137_s4 = sand.u32 1, %s647_s11   ;;  %s437_s7 = sshll.u32 %s655_s13, 7 }
  0x23   : > { %s772_s5 = scalar_select %p38_p10, %s647_s11, %s40_s26  }
  0x24   : > { %s422_s6 = sshll.u32 %s137_s4, 3  ;;  %s149_s16 = scalar_lea.hbm %s845_s0, %s437_s7 }
  0x25   : > { %s141_s22 = scalar_lea.vmem [#allocation2], %s422_s6  ;;  %p778_p11 = pnand %p460_p9, %p49_p13 }
  0x26   : > { %s151_s23 = sshll.u32 %s141_s22, 4  ;;  %s138_s18 = scalar_lea.sflag [#allocation3], %s137_s4  ;;  %s152_s23 = int_to_ptr.vmem [resolvable:$true] %s151_s23 }
  0x27   : > { %p549_p2 = pneg %p778_p11  ;;  %s560_s27 = scalar_lea.vmem %s152_s23, 128 }
  0x28   : > { %p561_p12 = scmp.ne.s32.totalorder %s152_s23, %s560_s27  ;;  %s662_s26 = smov [#allocation2]  }
  0x29   : > { %s565_s28 = sshll.u32 %s662_s26, 4  ;;  %s566_s28 = int_to_ptr.vmem [resolvable:$false] %s565_s28 }
  0x2a   : > { %p563_p3 = pnand %p561_p12, %p549_p2  ;;  %s567_s29 = scalar_lea.vmem %s566_s28, 256 }
  0x2b   : > { %p568_p7 = scmp.lt.s32.totalorder %s152_s23, %s566_s28  ;;  %p569_p6 = scmp.lt.s32.totalorder %s567_s29, %s560_s27 }
  0x2c   : > { %p564_p5 = pneg %p563_p3 }
  0x2d   : > { %p570_p4 = por %p569_p6, %p568_p7 }
  0x2f   : > { %p571_p10 = pnand %p570_p4, %p564_p5 }
  0x31   : > { %574 = shalt.err (!%p571_p10)
}
  0x32   : > { %454 = dma.hbm_to_vmem [thread:$0]  (!%p778_p11), %s149_s16, 128, %s152_s23, %s138_s18  }
  0x33   : > { %160 = sbr.rel (%p734_p8) target bundleno = 316 (0x13c), region = 28  ;;  %s789_s30 = sand.u32 (!%p734_p8), 1, %s643_s10  }
  0x34   : > { %s426_s4 = sshll.u32 (!%p734_p8), %s789_s30, 3  ;;  %s163_s6 = scalar_lea.sflag (!%p734_p8), [#allocation3], %s789_s30 }
  0x35   : > { %s166_s7 = scalar_lea.vmem (!%p734_p8), [#allocation2], %s426_s4  ;;  %p857_p9 = scmp.ne.s32.totalorder (!%p734_p8), %s851_s19, 0 }
  0x38   : > { %626 = dma.done.wait (%p857_p9), %s163_s6, 128  }
  0x39   : > { %628 = vsyncadd (%p857_p9), %s163_s6, 4294967168 }
  0x3a   : > { %630 = dma.done.wait (%p714_p1), [#allocation6], 64  }
  0x3b   : > { %632 = vsyncadd (%p714_p1), [#allocation6], 4294967232  ;;  %v663_v0 = vmov 0.0   ;;  %v193_v1 = vld [vmem:[%s166_s7] sm:$0xff]  ;;  %vm202_vm0 = vcmask 1043456   ;;  %vm198_vm1 = vcmask 31744  }
  0x3c   : > { %271 = vmatprep.mubr.f32.mxu0 %v663_v0  ;;  %v194_v2 = vmul.f32 %v193_v1, %v193_v1  ;;  %v195_v4 = vld [vmem:[#allocation5] sm:$0xf]  ;;  %s438_s17 = sshll.u32 %s651_s12, 7  ;;  %s190_s19 = scalar_lea.vmem [#allocation7], %s426_s4 }
  0x3d   : > { %s323_s21 = sshll.u32 %s190_s19, 4  ;;  %s321_s16 = scalar_lea.hbm %s847_s2, %s438_s17  ;;  %s324_s21 = int_to_ptr.vmem [resolvable:$true] %s323_s21 }
  0x3e   : > { %v197_v3 = vcombine.high %v194_v2, %v194_v2  ;;  %s307_s22 = scalar_lea.sflag [#allocation4], %s789_s30  ;;  %s575_s23 = scalar_lea.vmem %s324_s21, 128 }
  0x3f   : > { %p576_p1 = scmp.ne.s32.totalorder %s324_s21, %s575_s23  ;;  %s664_s24 = smov [#allocation7]  }
  0x40   : > { %429 = vmatprep.subr.msk.mxu0 %vm202_vm0, %v197_v3  ;;  %s579_s18 = sshll.u32 %s664_s24, 4  ;;  %s580_s18 = int_to_ptr.vmem [resolvable:$false] %s579_s18 }
  0x41   : > { %430 = vmatpush1.msk.msra.mxu0 %vm202_vm0, %v194_v2  ;;  %p577_p8 = pnand %p576_p1, %p766_p0  ;;  %s581_s12 = scalar_lea.vmem %s580_s18, 256 }
  0x42   : > { %431 = vmatmul.mubr.msk.f32.vlgmr.msra.gmra.mxu0 %vm198_vm1, %v195_v4  ;;  %p582_p11 = scmp.lt.s32.totalorder %s324_s21, %s580_s18  ;;  %p583_p2 = scmp.lt.s32.totalorder %s581_s12, %s575_s23 }
  0x43   : > { %p578_p13 = pneg %p577_p8 }
  0x44   : > { %p584_p12 = por %p583_p2, %p582_p11 }
  0x46   : > { %p585_p3 = pnand %p584_p12, %p578_p13 }
 0x102   : > { %v273_v5 = vpop.f32.mrf.mxu0 }
 0x103   : > { %v278_v6 = vmul.f32 3.3333334e-05, %v273_v5 }
 0x104   : > { %v275_v7 = vpop.f32.mrf.mxu0 }
 0x105   : > { %v280_v8 = vadd.f32 1.0, %v278_v6  ;;  %v279_v9 = vmul.f32 3.3333334e-05, %v275_v7 }
 0x107   : > { %513 = vrsqrt.f32 %v280_v8  ;;  %v281_v10 = vadd.f32 1.0, %v279_v9 }
 0x109   : > { %515 = vrsqrt.f32 %v281_v10 }
 0x114   : > { %v514_v11 = vpop.eup %513 }
 0x115   : > { %517 = vrsqrt.f32 %v514_v11  ;;  %vm286_vm2 = vcmp.eq.f32.partialorder %v514_v11, inf  ;;  %v289_v16 = vand.u32 2147483648, %v514_v11  ;;  %vm288_vm3 = vcmp.eq.f32.partialorder %v514_v11, 0.0 }
 0x116   : > { %v516_v12 = vpop.eup %515 }
 0x117   : > { %519 = vrsqrt.f32 %v516_v12  ;;  %vm293_vm4 = vcmp.eq.f32.partialorder %v516_v12, inf  ;;  %v296_v20 = vand.u32 2147483648, %v516_v12  ;;  %vm295_vm5 = vcmp.eq.f32.partialorder %v516_v12, 0.0 }
 0x122   : > { %v518_v13 = vpop.eup %517 }
 0x123   : > { %v285_v14 = vmul.f32 %v518_v13, %v514_v11 }
 0x124   : > { %v520_v15 = vpop.eup %519 }
 0x125   : > { %v287_v17 = vsel %vm286_vm2, %v514_v11, %v285_v14  ;;  %v292_v18 = vmul.f32 %v520_v15, %v516_v12 }
 0x126   : > { %v290_v19 = vsel %vm288_vm3, %v289_v16, %v287_v17 }
 0x127   : > { %v294_v21 = vsel %vm293_vm4, %v516_v12, %v292_v18  ;;  %v298_v23 = vmul.f32 %v514_v11, %v290_v19 }
 0x128   : > { %v297_v22 = vsel %vm295_vm5, %v296_v20, %v294_v21 }
 0x129   : > { %v299_v24 = vmul.f32 %v516_v12, %v297_v22 }
 0x12b   : > { %v302_v25 = vcombine.low %v298_v23, %v299_v24 }
 0x12d   : > { %v304_v26 = vmul.f32 %v302_v25, %v193_v1 }
 0x12f   : > { %305 = vst [vmem:[%s190_s19] sm:$0xff] %v304_v26 }
 0x130   : > { %588 = shalt.err (!%p585_p3)
}
 0x131   : > { %s589_s27 = scalar_lea.hbm %s321_s16, 128  ;;  %s593_s29 = scalar_lea.hbm %s847_s2, 256 }
 0x132   : > { %p590_p5 = scmp.ne.s32.totalorder %s321_s16, %s589_s27  ;;  %p594_p4 = scmp.lt.s32.totalorder %s321_s16, %s847_s2 }
 0x133   : > { %p595_p10 = scmp.lt.s32.totalorder %s593_s29, %s589_s27 }
 0x134   : > { %p591_p7 = pnand %p590_p5, %p766_p0 }
 0x135   : > { %p596_p9 = por %p595_p10, %p594_p4 }
 0x136   : > { %p592_p6 = pneg %p591_p7 }
 0x138   : > { %p597_p1 = pnand %p596_p9, %p592_p6 }
 0x13a   : > { %600 = shalt.err (!%p597_p1)
}
 0x13b   : > { %445 = dma.vmem_to_hbm [thread:$0]  (%p766_p0), %s324_s21, 128, %s321_s16, %s307_s22  }
 0x13c PF: > { %s335_s6 = sand.u32 1, %s639_s9   ;;  %p858_p8 = scmp.ne.s32.totalorder %s852_s20, 0 }
 0x13d   : > { %p859_p13 = scmp.ge.s32.totalorder %s659_s14, 2  ;;  %s336_s7 = scalar_lea.sflag [#allocation4], %s335_s6 }
 0x13f   : > { %p456_p11 = pnand %p859_p13, %p858_p8 }
 0x141   : > { %p457_p2 = pneg %p456_p11 }
 0x143   : > { %634 = dma.done.wait (%p457_p2), %s336_s7, 128  }
 0x144   : > { %636 = vsyncadd (%p457_p2), %s336_s7, 4294967168  ;;  %s19_s14 = sadd.s32 1, %s659_s14   ;;  %s860_s9 = smov %s643_s10 }
 0x145   : > { %p16_p12 = scmp.ge.s32.totalorder %s19_s14, 4   ;;  %s861_s10 = smov %s647_s11 }
 0x146   : > { %s862_s11 = smov %s772_s5  ;;  %s863_s12 = smov %s655_s13 }
 0x147   : > { %s864_s13 = smov %s866_s25  ;;  %18 = sbr.rel (!%p16_p12) target bundleno = 7 (0x7), region = 77 }
 0x14c   :  { %341 = vsyncpa [#allocation3], 1 }
 0x14d   :  { %343 = vsyncpa [#allocation3 + $0x1], 1 }
 0x14e   :  { %344 = vsyncpa [#allocation6], 1 }
 0x14f   :  { %345 = vsyncpa [#allocation4], 1 }
 0x150   :  { %347 = vsyncpa [#allocation4 + $0x1], 1 }

</bundles_post_ra>
